<compile_context>
chip_gen: v7x
topology: tpu7x:2x2x1
jax: 0.10.0
libtpu: 0.0.40
codegen_flags: <defaults>
</compile_context>

<pallas_src>
import functools

import jax
import jax.numpy as jnp
import numpy as np
from jax.experimental import pallas as pl
from jax.experimental.pallas import tpu as pltpu

_LANE = 128


# --------------------------------------------------------------------------
# Kernel: one (tm, tn) output tile, reduction over K tiles on grid axis 2.
# --------------------------------------------------------------------------
def _dense_kernel(*refs, activation, has_bias):
    if has_bias:
        x_ref, w_ref, b_ref, o_ref, acc_ref = refs
    else:
        x_ref, w_ref, o_ref, acc_ref = refs
        b_ref = None

    k = pl.program_id(2)

    @pl.when(k == 0)
    def _():
        acc_ref[...] = jnp.zeros_like(acc_ref)

    acc_ref[...] += jnp.dot(
        x_ref[...], w_ref[...], preferred_element_type=jnp.float32
    )

    @pl.when(k == pl.num_programs(2) - 1)
    def _():
        y = acc_ref[...]
        if has_bias:
            y = y + b_ref[...]
        if activation == "tanh":
            y = jnp.tanh(y)
        elif activation == "relu":
            y = jnp.maximum(y, 0.0)
        o_ref[...] = y.astype(o_ref.dtype)


# --------------------------------------------------------------------------
# Helpers.
# --------------------------------------------------------------------------
def _ceil_to(v, m):
    return ((v + m - 1) // m) * m


def _vmem_budget_bytes():
    cap = 64 << 20  # conservative fallback (v7x per-core physical VMEM)
    try:
        info = pltpu.get_tpu_info()
        cap = int(getattr(info, "vmem_capacity_bytes", cap))
    except Exception:
        pass
    return int(cap * 0.6)


# --------------------------------------------------------------------------
# One-time weight preprocessing (hoisted out of the per-call path).
# --------------------------------------------------------------------------
def prepare_dense(weight, bias=None, *, use_bf16=True,
                  tm_max=256, tn_max=512, tk_max=2048):
    """Preprocess PyTorch-layout weight (out_dim, in_dim) once.

    Transposes to (K, N), casts to bf16 (optional), pads to tile multiples and
    fixes the (tn, tk) tiling + padded extents so per-call work is minimal.
    """
    N, K = weight.shape
    in_dtype = jnp.bfloat16 if use_bf16 else jnp.float32
    in_bytes = 2 if use_bf16 else 4
    out_bytes = in_bytes

    # Lane-dim tiles: 256/512-aligned where possible (full MXU rows on
    # v6e/v7x); otherwise the whole 128-padded extent for small dims.
    tn = min(tn_max, _ceil_to(N, _LANE))
    tk = min(tk_max, _ceil_to(K, _LANE))

    # Cap the double-buffered footprint (assuming tm = tm_max) by VMEM budget.
    budget = _vmem_budget_bytes()

    def footprint(tk_, tn_):
        return (2 * tm_max * tk_ * in_bytes      # x tiles (double buffered)
                + 2 * tk_ * tn_ * in_bytes       # weight tiles
                + 2 * tm_max * tn_ * out_bytes   # output tiles
                + tm_max * tn_ * 4)              # f32 accumulator

    while footprint(tk, tn) > budget and tk > 512:
        tk = max(512, _ceil_to(tk // 2, _LANE))
    while footprint(tk, tn) > budget and tn > 256:
        tn = max(256, _ceil_to(tn // 2, _LANE))

    Np = _ceil_to(N, tn)
    Kp = _ceil_to(K, tk)

    wp = jnp.pad(jnp.asarray(weight).T.astype(in_dtype),
                 ((0, Kp - K), (0, Np - N)))
    prep = dict(w=wp, N=N, K=K, Np=Np, Kp=Kp, tn=tn, tk=tk, tm_max=tm_max,
                use_bf16=use_bf16)
    if bias is not None:
        prep["b"] = jnp.pad(jnp.asarray(bias, jnp.float32).reshape(1, N),
                            ((0, 0), (0, Np - N)))
    return prep


# --------------------------------------------------------------------------
# Per-call forward: pad activations, launch the kernel, strip padding.
# --------------------------------------------------------------------------
def dense_forward_prepared(prep, x, activation=None):
    M, K = x.shape
    assert K == prep["K"], "in_dim mismatch"

    use_bf16 = prep["use_bf16"]
    in_dtype = jnp.bfloat16 if use_bf16 else jnp.float32
    out_dtype = in_dtype
    in_bytes = 2 if use_bf16 else 4

    Kp, Np, tk, tn = prep["Kp"], prep["Np"], prep["tk"], prep["tn"]
    tm_align = 16 if use_bf16 else 8
    tm = min(prep["tm_max"], _ceil_to(M, tm_align))
    Mp = _ceil_to(M, tm)

    xp = jnp.pad(x.astype(in_dtype), ((0, Mp - M), (0, Kp - K)))

    has_bias = "b" in prep
    grid = (Mp // tm, Np // tn, Kp // tk)

    in_specs = [pl.BlockSpec((tm, tk), lambda i, j, k: (i, k)),
                pl.BlockSpec((tk, tn), lambda i, j, k: (k, j))]
    inputs = [xp, prep["w"]]
    if has_bias:
        in_specs.append(pl.BlockSpec((1, tn), lambda i, j, k: (0, j)))
        inputs.append(prep["b"])

    # Raise the scoped VMEM limit only when a big-tile config needs it.
    footprint = (2 * tm * tk * in_bytes + 2 * tk * tn * in_bytes
                 + 2 * tm * tn * in_bytes + tm * tn * 4
                 + (2 * tn * 4 if has_bias else 0))
    cp_kwargs = dict(dimension_semantics=("parallel", "parallel", "arbitrary"))
    if footprint > (28 << 20):
        cp_kwargs["vmem_limit_bytes"] = min(footprint + (8 << 20),
                                            _vmem_budget_bytes() + (8 << 20))

    out = pl.pallas_call(
        functools.partial(_dense_kernel, activation=activation,
                          has_bias=has_bias),
        out_shape=jax.ShapeDtypeStruct((Mp, Np), out_dtype),
        grid_spec=pltpu.PrefetchScalarGridSpec(
            num_scalar_prefetch=0,
            grid=grid,
            in_specs=in_specs,
            out_specs=pl.BlockSpec((tm, tn), lambda i, j, k: (i, j)),
            scratch_shapes=[pltpu.VMEM((tm, tn), jnp.float32)],
        ),
        compiler_params=pltpu.CompilerParams(**cp_kwargs),
    )(*inputs)

    return out[:M, :prep["N"]]


def dense_forward(x, weight, bias=None, activation=None, *, use_bf16=True):
    """Convenience one-shot path (prepares weights internally).

    For repeated calls with the same weights, call prepare_dense() once and
    reuse dense_forward_prepared().
    """
    prep = prepare_dense(weight, bias, use_bf16=use_bf16)
    return dense_forward_prepared(prep, x, activation)


def dense_apply(prep, x, activation=None, dropout=None):
    """Mirrors Dense.forward in eval mode (dropout is identity)."""
    # TODO(synk): training-mode nn.Dropout (stochastic masking via
    #             pltpu.prng_*) is not implemented; eval-mode identity only.
    del dropout
    return dense_forward_prepared(prep, x, activation)


# --------------------------------------------------------------------------
# Parameter init matching Dense.__init__ / reset_parameters.
# --------------------------------------------------------------------------
def init_dense_params(key, in_dim, out_dim, bias=False):
    kw, kb = jax.random.split(key)
    bound = float(np.sqrt(6.0 / (in_dim + out_dim)))           # xavier_uniform_
    p = {"w": jax.random.uniform(kw, (out_dim, in_dim), jnp.float32,
                                 -bound, bound)}
    if bias:
        # nn.Linear default bias init: U(-1/sqrt(fan_in), 1/sqrt(fan_in))
        bb = 1.0 / float(np.sqrt(in_dim))
        p["b"] = jax.random.uniform(kb, (out_dim,), jnp.float32, -bb, bb)
    return p


# --------------------------------------------------------------------------
# Pure-numpy (float64) reference of Dense.forward (eval mode).
# --------------------------------------------------------------------------
def dense_reference(params, x, activation=None):
    xf = np.asarray(x, np.float64)
    wf = np.asarray(params["w"], np.float64)
    y = xf @ wf.T
    if "b" in params:
        y = y + np.asarray(params["b"], np.float64)
    if activation == "tanh":
        y = np.tanh(y)
    elif activation == "relu":
        y = np.maximum(y, 0.0)
    return y


# --------------------------------------------------------------------------
if __name__ == "__main__":
    root = jax.random.PRNGKey(0)

    # (name, batch, in_dim, out_dim, activation, bias, use_bf16, atol)
    cases = [
        ("tanh_nobias_bf16",   4,  48,  72, "tanh", False, True,  3e-2),
        ("relu_bias_bf16",     4,  48,  72, "relu", True,  True,  3e-2),
        ("linear_nobias_bf16", 4,  48,  72, None,   False, True,  3e-2),
        ("tanh_bias_grid",     8, 512, 384, "tanh", True,  True,  3e-2),
        ("relu_bias_f32",      8, 256, 128, "relu", True,  False, 2e-3),
    ]

    for idx, (name, B, IN, OUT, act, has_bias, use_bf16, atol) in enumerate(cases):
        k_p, k_x = jax.random.split(jax.random.fold_in(root, idx))
        params = init_dense_params(k_p, IN, OUT, bias=has_bias)
        x = jax.random.normal(k_x, (B, IN), jnp.float32)

        # Weight preprocessing hoisted out of the per-call path.
        prep = prepare_dense(params["w"], params.get("b"), use_bf16=use_bf16)

        y = dense_apply(prep, x, activation=act, dropout=0.1)
        y = jax.block_until_ready(y)

        y_ref = dense_reference(params, x, activation=act)
        np.testing.assert_allclose(np.asarray(y, np.float64), y_ref,
                                   atol=atol, rtol=2e-2,
                                   err_msg=f"case {name} mismatch")

    print("KERNEL_OK")
</pallas_src>

<mosaic_0001>
module attributes {stable_mosaic.version = 11 : i64} {
  func.func @_dense_kernel(%arg0: i32, %arg1: i32, %arg2: i32, %arg3: memref<16x128xbf16, #tpu.memory_space<vmem>>, %arg4: memref<128x128xbf16, #tpu.memory_space<vmem>>, %arg5: memref<16x128xbf16, #tpu.memory_space<vmem>>, %arg6: memref<16x128xf32, #tpu.memory_space<vmem>>) attributes {dimension_semantics = [#tpu.dimension_semantics<parallel>, #tpu.dimension_semantics<parallel>, #tpu.dimension_semantics<arbitrary>], iteration_bounds = array<i64: 1, 1, 1>, scalar_prefetch = 0 : i64, scratch_operands = 1 : i64, tpu.core_type = #tpu.core_type<tc>, window_params = [{transform_indices = @transform_0, window_bounds = array<i64: 16, 128>}, {transform_indices = @transform_1, window_bounds = array<i64: 128, 128>}, {transform_indices = @transform_2, window_bounds = array<i64: 16, 128>}]} {
    %c0_i32 = arith.constant 0 : i32
    %0 = arith.cmpi eq, %arg2, %c0_i32 : i32
    %1 = arith.extui %0 : i1 to i32
    %c0_i32_0 = arith.constant 0 : i32
    %2 = arith.cmpi ne, %1, %c0_i32_0 : i32
    scf.if %2 {
      %cst_10 = arith.constant 0.000000e+00 : f32
      %12 = vector.broadcast %cst_10 : f32 to vector<16x128xf32>
      %c0_11 = arith.constant 0 : index
      %c0_12 = arith.constant 0 : index
      %13 = vector.load %arg6[%c0_11, %c0_12] : memref<16x128xf32, #tpu.memory_space<vmem>>, vector<16x128xf32>
      tpu.vector_store %arg6[%c0_11, %c0_12], %12 {strides = array<i32>} : memref<16x128xf32, #tpu.memory_space<vmem>>, vector<16x128xf32>,
    } else {
    }
    %c0 = arith.constant 0 : index
    %c0_1 = arith.constant 0 : index
    %3 = vector.load %arg6[%c0, %c0_1] : memref<16x128xf32, #tpu.memory_space<vmem>>, vector<16x128xf32>
    %c0_2 = arith.constant 0 : index
    %c0_3 = arith.constant 0 : index
    %4 = vector.load %arg3[%c0_2, %c0_3] : memref<16x128xbf16, #tpu.memory_space<vmem>>, vector<16x128xbf16>
    %c0_4 = arith.constant 0 : index
    %c0_5 = arith.constant 0 : index
    %5 = vector.load %arg4[%c0_4, %c0_5] : memref<128x128xbf16, #tpu.memory_space<vmem>>, vector<128x128xbf16>
    %cst = arith.constant dense<0.000000e+00> : vector<16x128xf32>
    %6 = tpu.matmul %4, %5, %cst {dimension_numbers = #tpu.dot_dimension_numbers<[1], [0], [0], [1], [0, 0, 1, 1], [], []>} : vector<16x128xbf16>, vector<128x128xbf16>, vector<16x128xf32> -> vector<16x128xf32>
    %7 = arith.addf %3, %6 : vector<16x128xf32>
    %c0_6 = arith.constant 0 : index
    %c0_7 = arith.constant 0 : index
    %8 = vector.load %arg6[%c0_6, %c0_7] : memref<16x128xf32, #tpu.memory_space<vmem>>, vector<16x128xf32>
    tpu.vector_store %arg6[%c0_6, %c0_7], %7 {strides = array<i32>} : memref<16x128xf32, #tpu.memory_space<vmem>>, vector<16x128xf32>,
    %c0_i32_8 = arith.constant 0 : i32
    %9 = arith.cmpi eq, %arg2, %c0_i32_8 : i32
    %10 = arith.extui %9 : i1 to i32
    %c0_i32_9 = arith.constant 0 : i32
    %11 = arith.cmpi ne, %10, %c0_i32_9 : i32
    scf.if %11 {
      %c0_10 = arith.constant 0 : index
      %c0_11 = arith.constant 0 : index
      %12 = vector.load %arg6[%c0_10, %c0_11] : memref<16x128xf32, #tpu.memory_space<vmem>>, vector<16x128xf32>
      %13 = math.tanh %12 : vector<16x128xf32>
      %14 = arith.truncf %13 : vector<16x128xf32> to vector<16x128xbf16>
      %c0_12 = arith.constant 0 : index
      %c0_13 = arith.constant 0 : index
      %15 = vector.load %arg5[%c0_12, %c0_13] : memref<16x128xbf16, #tpu.memory_space<vmem>>, vector<16x128xbf16>
      tpu.vector_store %arg5[%c0_12, %c0_13], %14 {strides = array<i32>} : memref<16x128xbf16, #tpu.memory_space<vmem>>, vector<16x128xbf16>,
    } else {
    }
    return
  }
  func.func @transform_0(%arg0: i32, %arg1: i32, %arg2: i32) -> (i32, i32) {
    %c0_i32 = arith.constant 0 : i32
    return %arg0, %arg2 : i32, i32
  }
  func.func @transform_1(%arg0: i32, %arg1: i32, %arg2: i32) -> (i32, i32) {
    %c0_i32 = arith.constant 0 : i32
    return %arg2, %arg1 : i32, i32
  }
  func.func @transform_2(%arg0: i32, %arg1: i32, %arg2: i32) -> (i32, i32) {
    %c0_i32 = arith.constant 0 : i32
    return %arg0, %arg1 : i32, i32
  }
}

</mosaic_0001>

<bundles_post_ra>
// kernel: tpu_custom_call.1
= control target key start
LH: loop header
LB: loop body
LE: loop exit
PB: predicated region body
PF: predicated region fallthrough
CT: control target
= control target key end

     0   :  { %7 = vsyncpa [#allocation4], 0  ;;  %s407_s0 = inlined_call_operand.hbm [shape: bf16[16,128], index: 0, kind: input, shape index: {}]   ;;  %s408_s1 = inlined_call_operand.hbm [shape: bf16[128,128], index: 1, kind: input, shape index: {}]   ;;  %s409_s2 = inlined_call_operand.hbm [shape: bf16[16,128], index: 2, kind: output, shape index: {}]  }
   0x1   :  { %8 = vsyncpa [#allocation7], 0 }
   0x2   :  { %9 = vsyncpa [#allocation5], 0  ;;  %s340_s9 = smov [#allocation3]   ;;  %s268_s13 = scalar_lea.hbm %s407_s0, 128 }
   0x3   :  { %s15_s10 = sshll.u32 %s340_s9, 4  ;;  %p269_p0 = scmp.ne.s32.totalorder %s407_s0, %s268_s13  ;;  %s16_s10 = int_to_ptr.vmem [resolvable:$true] %s15_s10 }
   0x4   :  { %p272_p1 = scmp.lt.u32.totalorder %s268_s13, %s407_s0 }
   0x6   :  { %p274_p2 = pnand %p272_p1, %p269_p0 }
   0x8   :  { %277 = shalt.err (!%p274_p2)
}
   0x9   :  { %s278_s18 = scalar_lea.vmem %s16_s10, 128  ;;  %p283_p4 = scmp.lt.s32.totalorder %s16_s10, %s16_s10 }
   0xa   :  { %p279_p3 = scmp.ne.s32.totalorder %s16_s10, %s278_s18  ;;  %p284_p5 = scmp.lt.s32.totalorder %s278_s18, %s278_s18 }
   0xc   :  { %p285_p6 = por %p284_p5, %p283_p4 }
   0xe   :  { %p286_p7 = pnand %p285_p6, %p279_p3 }
  0x10   :  { %289 = shalt.err (!%p286_p7)
}
  0x11   :  { %s341_s19 = smov 64   ;;  %s342_s20 = smov 4  }
  0x12   :  { %21 = dma.hbm_to_vmem [thread:$0]  %s407_s0, 128, %s16_s10, [#allocation4], %s341_s19, %s341_s19, %s342_s20  }
  0x13   :  { %s343_s23 = smov [#allocation6]   ;;  %s290_s27 = scalar_lea.hbm %s408_s1, 1024 }
  0x14   :  { %s27_s24 = sshll.u32 %s343_s23, 4  ;;  %p291_p8 = scmp.ne.s32.totalorder %s408_s1, %s290_s27  ;;  %s28_s24 = int_to_ptr.vmem [resolvable:$true] %s27_s24 }
  0x15   :  { %p294_p9 = scmp.lt.u32.totalorder %s290_s27, %s408_s1 }
  0x17   :  { %p296_p10 = pnand %p294_p9, %p291_p8 }
  0x19   :  { %299 = shalt.err (!%p296_p10)
}
  0x1a   :  { %s300_s4 = scalar_lea.vmem %s28_s24, 1024  ;;  %p305_p12 = scmp.lt.s32.totalorder %s28_s24, %s28_s24 }
  0x1b   :  { %p301_p11 = scmp.ne.s32.totalorder %s28_s24, %s300_s4  ;;  %p306_p13 = scmp.lt.s32.totalorder %s300_s4, %s300_s4 }
  0x1d   :  { %p307_p0 = por %p306_p13, %p305_p12 }
  0x1f   :  { %p308_p1 = pnand %p307_p0, %p301_p11 }
  0x21   :  { %311 = shalt.err (!%p308_p1)
}
  0x22   :  { %33 = dma.hbm_to_vmem [thread:$0]  %s408_s1, 1024, %s28_s24, [#allocation7], %s341_s19, %s341_s19, %s342_s20  }
  0x23   :  { %334 = dma.done.wait [#allocation4], 128  }
  0x24   :  { %335 = vsyncadd [#allocation4], 4294967168 }
  0x25   :  { %336 = dma.done.wait [#allocation7], 1024  }
  0x26   :  { %337 = vsyncadd [#allocation7], 4294966272  ;;  %v344_v0 = vmov 0.0   ;;  %vm345_vm0 = vmmov 0   ;;  %v255_v1 = vld [vmem:[#allocation6] sm:$0xff]   ;;  %v256_v2 = vld [vmem:[#allocation6 + $0x8] sm:$0xff]  }
  0x27   :  { %228 = vmatprep.subr.bf16.mxu0 %v344_v0  ;;  %244 = vmatprep.mubr.msk.bf16.mxu0 %vm345_vm0, %v344_v0  ;;  %v257_v3 = vld [vmem:[#allocation6 + $0x10] sm:$0xff]   ;;  %v258_v4 = vld [vmem:[#allocation6 + $0x18] sm:$0xff]   ;;  %v259_v5 = vld [vmem:[#allocation6 + $0x20] sm:$0xff]   ;;  %s346_s1 = smov [#allocation8]  }
  0x28   :  { %229 = vmatpush3.bf16.msra.mxu0 %v255_v1  ;;  %v260_v6 = vld [vmem:[#allocation6 + $0x28] sm:$0xff]   ;;  %v261_v7 = vld [vmem:[#allocation6 + $0x30] sm:$0xff]   ;;  %v262_v8 = vld [vmem:[#allocation6 + $0x38] sm:$0xff]   ;;  %s188_s6 = sshll.u32 %s346_s1, 4  ;;  %s189_s6 = int_to_ptr.vmem [resolvable:$true] %s188_s6 }
  0x29   :  { %230 = vmatprep.subr.bf16.mxu0 %v344_v0  ;;  %v263_v9 = vld [vmem:[#allocation3] sm:$0xff]   ;;  %s312_s7 = scalar_lea.vmem %s189_s6, 128  ;;  %p317_p3 = scmp.lt.s32.totalorder %s189_s6, %s189_s6 }
  0x2a   :  { %p313_p2 = scmp.ne.s32.totalorder %s189_s6, %s312_s7  ;;  %p318_p4 = scmp.lt.s32.totalorder %s312_s7, %s312_s7 }
  0x2c   :  { %231 = vmatpush3.bf16.msra.mxu0 %v256_v2  ;;  %p319_p5 = por %p318_p4, %p317_p3 }
  0x2d   :  { %232 = vmatprep.subr.bf16.mxu0 %v344_v0 }
  0x2e   :  { %p320_p6 = pnand %p319_p5, %p313_p2 }
  0x30   :  { %233 = vmatpush3.bf16.msra.mxu0 %v257_v3 }
  0x31   :  { %234 = vmatprep.subr.bf16.mxu0 %v344_v0 }
  0x34   :  { %235 = vmatpush3.bf16.msra.mxu0 %v258_v4 }
  0x35   :  { %236 = vmatprep.subr.bf16.mxu0 %v344_v0 }
  0x38   :  { %237 = vmatpush3.bf16.msra.mxu0 %v259_v5 }
  0x39   :  { %238 = vmatprep.subr.bf16.mxu0 %v344_v0 }
  0x3c   :  { %239 = vmatpush3.bf16.msra.mxu0 %v260_v6 }
  0x3d   :  { %240 = vmatprep.subr.bf16.mxu0 %v344_v0 }
  0x40   :  { %241 = vmatpush3.bf16.msra.mxu0 %v261_v7 }
  0x41   :  { %242 = vmatprep.subr.bf16.mxu0 %v344_v0 }
  0x44   :  { %243 = vmatpush3.bf16.msra.mxu0 %v262_v8 }
  0x47   :  { %245 = vmatmul.mubr.bf16.vlgmr.msra.gmra.mrb[0].mxu0 %v263_v9 }
 0x11a   :  { %v155_v10 = vpop.f32.mrb[0].mxu0 }
 0x11b   :  { %v246_v11 = vpop.f32.mrb[1].mxu0  ;;  %264 = vtanh.f32 %v155_v10 }
 0x11c   :  { %v158_v12 = vpop.f32.mrb[2].mxu0 }
 0x11d   :  { %266 = vtanh.f32 %v158_v12  ;;  %v247_v13 = vpop.f32.mrb[3].mxu0 }
 0x125   :  { %v265_v14 = vpop.eup %264 }
 0x127   :  { %v267_v15 = vpop.eup %266 }
 0x128   :  { %v217_v16 = vpack.c.bf16 %v267_v15, %v265_v14 }
 0x12a   :  { %218 = vst [vmem:[#allocation8] sm:$0xff] %v217_v16  }
 0x12b   :  { %323 = shalt.err (!%p320_p6)
}
 0x12c   :  { %s324_s10 = scalar_lea.hbm %s409_s2, 128 }
 0x12d   :  { %p325_p7 = scmp.ne.s32.totalorder %s409_s2, %s324_s10  ;;  %p328_p8 = scmp.lt.u32.totalorder %s324_s10, %s409_s2 }
 0x12f   :  { %p330_p9 = pnand %p328_p8, %p325_p7 }
 0x131   :  { %333 = shalt.err (!%p330_p9)
}
 0x132   :  { %194 = dma.vmem_to_hbm [thread:$0]  %s189_s6, 128, %s409_s2, [#allocation5], %s341_s19, %s341_s19, %s342_s20  }
 0x133   :  { %338 = dma.done.wait [#allocation5], 128  }
 0x134   :  { %339 = vsyncadd [#allocation5], 4294967168 }
 0x135   :  { %198 = vsyncpa [#allocation4], 1 }
 0x136   :  { %199 = vsyncpa [#allocation7], 1 }
 0x137   :  { %200 = vsyncpa [#allocation5], 1 }

</bundles_post_ra>
